<compile_context>
chip_gen: v7x
topology: tpu7x:2x2x1
jax: 0.10.0
libtpu: 0.0.40
codegen_flags: <defaults>
</compile_context>

<pallas_src>
import functools

import jax
import jax.numpy as jnp
from jax import lax
from jax.experimental import pallas as pl
from jax.experimental.pallas import tpu as pltpu


def _cdiv(a: int, b: int) -> int:
    return -(-a // b)


def _round_up(x: int, m: int) -> int:
    return _cdiv(x, m) * m


# Stay comfortably inside v5e's 16 MiB scoped-VMEM default (v6e/v7x: 32 MiB).
_VMEM_BUDGET_BYTES = 12 * 1024 * 1024


def _choose_tm(M: int, K: int, Np: int, itemsize: int, row_tile) -> int:
    """Row-tile choice: big tiles amortize the ~0.35us/step overhead; >=2
    (preferably even) grid steps so ("parallel",) shards across v7x's 2 TCs."""
    if row_tile is not None:
        tm = _round_up(min(int(row_tile), max(M, 8)), 8)
    elif M <= 256:
        tm = _round_up(M, 8)                      # tiny input: one step
    elif M <= 2048:
        tm = _round_up(_cdiv(M, 2), 8)            # exactly 2 steps
    else:
        steps = _cdiv(M, 1024)                    # target ~1024 rows/step
        if steps % 2:
            steps += 1                            # even step count (TC balance)
        tm = _round_up(_cdiv(M, steps), 8)

    def vmem_bytes(t):
        # double-buffered LHS + output blocks, resident weight + packed params
        return 2 * t * (K + Np) * itemsize + 2 * (K + 8) * Np * itemsize

    while tm > 256 and vmem_bytes(tm) > _VMEM_BUDGET_BYTES:
        tm = _round_up(_cdiv(tm, 2), 8)
    return tm


def _patch_embed_kernel(x_ref, w_ref, prm_ref, o_ref, *, true_n, padded_n):
    # x_ref: [tm, K]   w_ref: [K, Np]   prm_ref: [8, Np] (rows: bias,gamma,beta)
    # o_ref: [tm, Np]
    # MXU matmul in the stream dtype, f32 accumulation.
    y = jnp.dot(x_ref[...], w_ref[...], preferred_element_type=jnp.float32)

    prm = prm_ref[...].astype(jnp.float32)
    bias = prm[0:1, :]
    gamma = prm[1:2, :]
    beta = prm[2:3, :]
    y = y + bias

    inv_n = jnp.float32(1.0 / true_n)
    if padded_n:
        # Mask padded channel lanes out of the statistics so they cannot
        # perturb mean/var regardless of the padding values (robustness).
        lane = lax.broadcasted_iota(jnp.int32, y.shape, 1)
        mask = lane < true_n
        y = jnp.where(mask, y, 0.0)

    # Centered (two-pass) variance in f32: robust to large conv-output means.
    mean = jnp.sum(y, axis=-1, keepdims=True) * inv_n
    diff = y - mean
    if padded_n:
        diff = jnp.where(mask, diff, 0.0)
    var = jnp.sum(diff * diff, axis=-1, keepdims=True) * inv_n

    y_norm = diff * lax.rsqrt(var + 1e-5)          # eps matches nn.LayerNorm
    out = y_norm * gamma + beta
    o_ref[...] = out.astype(o_ref.dtype)


@functools.partial(
    jax.jit,
    static_argnames=("patch_size", "output_format", "compute_dtype", "row_tile"),
)
def patch_embedding_pallas(
    x_nchw,
    conv_w,
    conv_b,
    ln_gamma,
    ln_beta,
    *,
    patch_size,
    output_format="bchw",     # "bchw" (module-faithful) | "bhwc" | "tokens"
    compute_dtype=None,       # e.g. jnp.bfloat16 to halve the heavy HBM streams
    row_tile=None,            # sweepable row-tile override
):
    """x_nchw: [B, C, H, W]; conv_w: [N, C, p, p]; conv_b/gamma/beta: [N]."""
    B, C, H, W = x_nchw.shape
    N = conv_w.shape[0]
    p = patch_size
    Hp, Wp = H // p, W // p
    M = B * Hp * Wp
    K = C * p * p

    stream_dt = x_nchw.dtype if compute_dtype is None else jnp.dtype(compute_dtype)
    out_dt = x_nchw.dtype

    # --- im2col (one fused XLA copy; see header note / TODO for the in-kernel
    # variant).  Feature order (c, kh, kw) matches the flattened Conv2d weight.
    patches = x_nchw.reshape(B, C, Hp, p, Wp, p)
    patches = patches.transpose(0, 2, 4, 1, 3, 5).reshape(M, K).astype(stream_dt)

    # Lane-dense output: pad N to a multiple of 128 (unmasked vst).
    Np = _round_up(N, 128)
    # NOTE: K is deliberately left unpadded (memory-bound; see header).

    tm = _choose_tm(M, K, Np, jnp.dtype(stream_dt).itemsize, row_tile)
    M_pad = _round_up(M, tm)
    if M_pad != M:
        patches = jnp.pad(patches, ((0, M_pad - M), (0, 0)))

    w_mat = conv_w.reshape(N, K).T.astype(stream_dt)       # [K, N]
    if Np != N:
        w_mat = jnp.pad(w_mat, ((0, 0), (0, Np - N)))       # zero columns

    # bias / gamma / beta packed into one [8, Np] f32 operand (rows 0..2);
    # padded columns are zero AND the kernel masks them out of the LN stats.
    prm_rows = jnp.stack(
        [conv_b.astype(jnp.float32),
         ln_gamma.astype(jnp.float32),
         ln_beta.astype(jnp.float32)]
    )                                                        # [3, N]
    prm = jnp.zeros((8, Np), jnp.float32).at[:3, :N].set(prm_rows)

    grid = (M_pad // tm,)
    kernel = functools.partial(_patch_embed_kernel, true_n=N, padded_n=(Np != N))

    out = pl.pallas_call(
        kernel,
        out_shape=jax.ShapeDtypeStruct((M_pad, Np), out_dt),
        grid_spec=pltpu.PrefetchScalarGridSpec(
            num_scalar_prefetch=0,
            grid=grid,
            in_specs=[
                pl.BlockSpec((tm, K), lambda i: (i, 0)),    # patch rows
                pl.BlockSpec((K, Np), lambda i: (0, 0)),    # resident weight
                pl.BlockSpec((8, Np), lambda i: (0, 0)),    # packed bias/gamma/beta
            ],
            out_specs=pl.BlockSpec((tm, Np), lambda i: (i, 0)),
        ),
        compiler_params=pltpu.CompilerParams(
            # Shards grid steps across v7x's 2 TensorCores; no-op on v5e/v6e.
            dimension_semantics=("parallel",),
            allow_input_fusion=[True, False, False],
        ),
    )(patches, w_mat, prm)

    tokens = out[:M, :N]
    if output_format == "tokens":
        return tokens.reshape(B, Hp * Wp, N)
    if output_format == "bhwc":
        return tokens.reshape(B, Hp, Wp, N)
    if output_format == "bchw":
        # Module-faithful NCHW output (costs one extra HBM round trip; use
        # "bhwc"/"tokens" when the consumer flattens to tokens anyway).
        return tokens.reshape(B, Hp, Wp, N).transpose(0, 3, 1, 2)
    raise ValueError(f"unknown output_format: {output_format!r}")


def _reference(x_nchw, conv_w, conv_b, ln_gamma, ln_beta, patch_size):
    """Pure-JAX reference mirroring the PyTorch module (f32)."""
    y = lax.conv_general_dilated(
        x_nchw.astype(jnp.float32),
        conv_w.astype(jnp.float32),
        window_strides=(patch_size, patch_size),
        padding="VALID",
        dimension_numbers=("NCHW", "OIHW", "NCHW"),
    ) + conv_b.reshape(1, -1, 1, 1)
    y = y.transpose(0, 2, 3, 1)                    # bchw -> bhwc
    mean = jnp.mean(y, axis=-1, keepdims=True)
    var = jnp.mean(jnp.square(y - mean), axis=-1, keepdims=True)
    y = (y - mean) * lax.rsqrt(var + 1e-5) * ln_gamma + ln_beta
    return y.transpose(0, 3, 1, 2)                 # bhwc -> bchw


if __name__ == "__main__":
    key = jax.random.PRNGKey(0)
    k_x, k_w, k_b, k_g, k_beta = jax.random.split(key, 5)

    # Small shapes consistent with the module's forward.
    B, C, H, W = 2, 4, 16, 16
    patch_size = 4
    out_channels = 32

    x = jax.random.normal(k_x, (B, C, H, W), dtype=jnp.float32)
    conv_w = jax.random.normal(
        k_w, (out_channels, C, patch_size, patch_size), dtype=jnp.float32
    ) * 0.1
    conv_b = jax.random.normal(k_b, (out_channels,), dtype=jnp.float32) * 0.1
    ln_gamma = 1.0 + 0.01 * jax.random.normal(k_g, (out_channels,), dtype=jnp.float32)
    ln_beta = 0.01 * jax.random.normal(k_beta, (out_channels,), dtype=jnp.float32)

    ref = _reference(x, conv_w, conv_b, ln_gamma, ln_beta, patch_size)

    # 1) Module-faithful NCHW output, f32 streams (tight tolerance).
    out = patch_embedding_pallas(
        x, conv_w, conv_b, ln_gamma, ln_beta, patch_size=patch_size
    )
    out = jax.block_until_ready(out)
    assert out.shape == (B, out_channels, H // patch_size, W // patch_size)
    assert jnp.allclose(out, ref, atol=1e-4, rtol=1e-4)

    # 2) Repack-free BHWC output (review item #2: skip the NCHW round trip).
    out_bhwc = patch_embedding_pallas(
        x, conv_w, conv_b, ln_gamma, ln_beta,
        patch_size=patch_size, output_format="bhwc",
    )
    out_bhwc = jax.block_until_ready(out_bhwc)
    assert jnp.allclose(out_bhwc, ref.transpose(0, 2, 3, 1), atol=1e-4, rtol=1e-4)

    # 3) bf16 heavy streams (review item #3), LN math still f32.
    out_bf16 = patch_embedding_pallas(
        x, conv_w, conv_b, ln_gamma, ln_beta,
        patch_size=patch_size, compute_dtype=jnp.bfloat16,
    )
    out_bf16 = jax.block_until_ready(out_bf16)
    assert jnp.allclose(out_bf16, ref, atol=7.5e-2, rtol=0.0)

    print("KERNEL_OK")
</pallas_src>

<mosaic_0001>
module attributes {stable_mosaic.version = 11 : i64} {
  func.func @_patch_embed_kernel(%arg0: i32, %arg1: memref<32x64xf32, #tpu.memory_space<vmem>>, %arg2: memref<64x128xf32, #tpu.memory_space<vmem>>, %arg3: memref<8x128xf32, #tpu.memory_space<vmem>>, %arg4: memref<32x128xf32, #tpu.memory_space<vmem>>) attributes {dimension_semantics = [#tpu.dimension_semantics<parallel>], iteration_bounds = array<i64: 1>, scalar_prefetch = 0 : i64, scratch_operands = 0 : i64, tpu.core_type = #tpu.core_type<tc>, window_params = [{transform_indices = @transform_0, window_bounds = array<i64: 32, 64>}, {pipeline_mode = #tpu.pipeline_mode<synchronous>, transform_indices = @transform_1, window_bounds = array<i64: 64, 128>}, {pipeline_mode = #tpu.pipeline_mode<synchronous>, transform_indices = @transform_2, window_bounds = array<i64: 8, 128>}, {transform_indices = @transform_3, window_bounds = array<i64: 32, 128>}]} {
    %c0 = arith.constant 0 : index
    %c0_0 = arith.constant 0 : index
    %0 = vector.load %arg1[%c0, %c0_0] : memref<32x64xf32, #tpu.memory_space<vmem>>, vector<32x64xf32>
    %c0_1 = arith.constant 0 : index
    %c0_2 = arith.constant 0 : index
    %1 = vector.load %arg2[%c0_1, %c0_2] : memref<64x128xf32, #tpu.memory_space<vmem>>, vector<64x128xf32>
    %cst = arith.constant dense<0.000000e+00> : vector<32x128xf32>
    %2 = tpu.matmul %0, %1, %cst {dimension_numbers = #tpu.dot_dimension_numbers<[1], [0], [0], [1], [0, 0, 1, 1], [], []>} : vector<32x64xf32>, vector<64x128xf32>, vector<32x128xf32> -> vector<32x128xf32>
    %c0_3 = arith.constant 0 : index
    %c0_4 = arith.constant 0 : index
    %3 = vector.load %arg3[%c0_3, %c0_4] : memref<8x128xf32, #tpu.memory_space<vmem>>, vector<8x128xf32>
    %4 = vector.extract_strided_slice %3 {offsets = [0, 0], sizes = [1, 128], strides = [1, 1]} : vector<8x128xf32> to vector<1x128xf32>
    %5 = vector.extract_strided_slice %3 {offsets = [1, 0], sizes = [1, 128], strides = [1, 1]} : vector<8x128xf32> to vector<1x128xf32>
    %6 = vector.extract_strided_slice %3 {offsets = [2, 0], sizes = [1, 128], strides = [1, 1]} : vector<8x128xf32> to vector<1x128xf32>
    %7 = vector.broadcast %4 : vector<1x128xf32> to vector<32x128xf32>
    %8 = arith.addf %2, %7 : vector<32x128xf32>
    %9 = tpu.iota {dimensions = array<i32: 1>} : vector<32x128xi32>
    %c32_i32 = arith.constant 32 : i32
    %10 = vector.broadcast %c32_i32 : i32 to vector<32x128xi32>
    %11 = arith.cmpi slt, %9, %10 : vector<32x128xi32>
    %cst_5 = arith.constant 0.000000e+00 : f32
    %12 = vector.broadcast %cst_5 : f32 to vector<32x128xf32>
    %13 = arith.select %11, %8, %12 : vector<32x128xi1>, vector<32x128xf32>
    %cst_6 = arith.constant dense<0.000000e+00> : vector<32xf32>
    %14 = vector.multi_reduction <add>, %13, %cst_6 [1] : vector<32x128xf32> to vector<32xf32>
    %15 = vector.shape_cast %14 : vector<32xf32> to vector<32x1xf32>
    %cst_7 = arith.constant 3.125000e-02 : f32
    %16 = vector.broadcast %cst_7 : f32 to vector<32x1xf32>
    %17 = arith.mulf %15, %16 : vector<32x1xf32>
    %18 = vector.broadcast %17 : vector<32x1xf32> to vector<32x128xf32>
    %19 = arith.subf %13, %18 : vector<32x128xf32>
    %cst_8 = arith.constant 0.000000e+00 : f32
    %20 = vector.broadcast %cst_8 : f32 to vector<32x128xf32>
    %21 = arith.select %11, %19, %20 : vector<32x128xi1>, vector<32x128xf32>
    %22 = arith.mulf %21, %21 : vector<32x128xf32>
    %cst_9 = arith.constant dense<0.000000e+00> : vector<32xf32>
    %23 = vector.multi_reduction <add>, %22, %cst_9 [1] : vector<32x128xf32> to vector<32xf32>
    %24 = vector.shape_cast %23 : vector<32xf32> to vector<32x1xf32>
    %cst_10 = arith.constant 3.125000e-02 : f32
    %25 = vector.broadcast %cst_10 : f32 to vector<32x1xf32>
    %26 = arith.mulf %24, %25 : vector<32x1xf32>
    %cst_11 = arith.constant 9.99999974E-6 : f32
    %27 = vector.broadcast %cst_11 : f32 to vector<32x1xf32>
    %28 = arith.addf %26, %27 : vector<32x1xf32>
    %29 = math.rsqrt %28 : vector<32x1xf32>
    %30 = vector.broadcast %29 : vector<32x1xf32> to vector<32x128xf32>
    %31 = arith.mulf %21, %30 : vector<32x128xf32>
    %32 = vector.broadcast %5 : vector<1x128xf32> to vector<32x128xf32>
    %33 = arith.mulf %31, %32 : vector<32x128xf32>
    %34 = vector.broadcast %6 : vector<1x128xf32> to vector<32x128xf32>
    %35 = arith.addf %33, %34 : vector<32x128xf32>
    %c0_12 = arith.constant 0 : index
    %c0_13 = arith.constant 0 : index
    %36 = vector.load %arg4[%c0_12, %c0_13] : memref<32x128xf32, #tpu.memory_space<vmem>>, vector<32x128xf32>
    tpu.vector_store %arg4[%c0_12, %c0_13], %35 {strides = array<i32>} : memref<32x128xf32, #tpu.memory_space<vmem>>, vector<32x128xf32>,
    return
  }
  func.func @transform_0(%arg0: i32) -> (i32, i32) {
    %c0_i32 = arith.constant 0 : i32
    %c0_i32_0 = arith.constant 0 : i32
    return %arg0, %c0_i32 : i32, i32
  }
  func.func @transform_1(%arg0: i32) -> (i32, i32) {
    %c0_i32 = arith.constant 0 : i32
    %c0_i32_0 = arith.constant 0 : i32
    %c0_i32_1 = arith.constant 0 : i32
    return %c0_i32, %c0_i32_0 : i32, i32
  }
  func.func @transform_2(%arg0: i32) -> (i32, i32) {
    %c0_i32 = arith.constant 0 : i32
    %c0_i32_0 = arith.constant 0 : i32
    %c0_i32_1 = arith.constant 0 : i32
    return %c0_i32, %c0_i32_0 : i32, i32
  }
  func.func @transform_3(%arg0: i32) -> (i32, i32) {
    %c0_i32 = arith.constant 0 : i32
    %c0_i32_0 = arith.constant 0 : i32
    return %arg0, %c0_i32 : i32, i32
  }
}

</mosaic_0001>

<bundles_post_ra>
// kernel: patch_embedding_pallas.1
= control target key start
LH: loop header
LB: loop body
LE: loop exit
PB: predicated region body
PF: predicated region fallthrough
CT: control target
= control target key end

     0   :  { %vm32_vm0 = vcmask 523264   ;;  %s414_s0 = inlined_call_operand.vmem [shape: f32[32,64], index: 0, kind: input, shape index: {}]   ;;  %s415_s1 = inlined_call_operand.vmem [shape: f32[64,128], index: 1, kind: input, shape index: {}]   ;;  %s416_s2 = inlined_call_operand.vmem [shape: f32[8,128], index: 2, kind: input, shape index: {}]   ;;  %s417_s3 = inlined_call_operand.hbm [shape: f32[32,128], index: 3, kind: output, shape index: {}]  }
   0x1   :  { %v19_v0 = vld [vmem:[%s415_s1] sm:$0xff]  ;;  %v20_v1 = vld [vmem:[%s415_s1 + $0x8] sm:$0xff]  ;;  %v21_v2 = vld [vmem:[%s415_s1 + $0x10] sm:$0xff] }
   0x2   :  { %v259_v3 = vpack.c.bf16 %v20_v1, %v19_v0  ;;  %v22_v4 = vld [vmem:[%s415_s1 + $0x18] sm:$0xff]  ;;  %v23_v6 = vld [vmem:[%s415_s1 + $0x20] sm:$0xff]  ;;  %v24_v7 = vld [vmem:[%s415_s1 + $0x28] sm:$0xff] }
   0x3   :  { %v263_v5 = vpack.c.bf16 %v22_v4, %v21_v2  ;;  %v15_v8 = vld [vmem:[%s414_s0] sm:$0xff]  ;;  %v17_v9 = vld [vmem:[%s414_s0 + $0x10] sm:$0xff] }
   0x4   :  { %260 = vmatprep.subr.bf16.mxu0 %v259_v3  ;;  %275 = vmatprep.subr.bf16.mxu1 %v259_v3 }
   0x5   :  { %262 = vmatpush3.bf16.msra.mxu0 %v259_v3  ;;  %279 = vmatpush3.bf16.msra.mxu1 %v259_v3 }
   0x6   :  { %8 = vsyncpa [#allocation3], 0  ;;  %264 = vmatprep.subr.bf16.mxu0 %v263_v5  ;;  %276 = vmatprep.subr.bf16.mxu1 %v263_v5  ;;  %v267_v10 = vpack.c.bf16 %v24_v7, %v23_v6  ;;  %v25_v11 = vld [vmem:[%s415_s1 + $0x30] sm:$0xff]  ;;  %v26_v12 = vld [vmem:[%s415_s1 + $0x38] sm:$0xff]  ;;  %v28_v16 = vlaneseq }
   0x7   :  { %253 = vmatprep.mubr.msk.f32.mxu0 %vm32_vm0, %v15_v8  ;;  %256 = vmatprep.mubr.msk.f32.mxu1 %vm32_vm0, %v17_v9  ;;  %v271_v13 = vpack.c.bf16 %v26_v12, %v25_v11  ;;  %v16_v14 = vld [vmem:[%s414_s0 + $0x8] sm:$0xff]  ;;  %v18_v15 = vld [vmem:[%s414_s0 + $0x18] sm:$0xff]  ;;  %v387_v19 = vld [vmem:[%s416_s2] sm:$0xff]  ;;  %s318_s0 = smov [#allocation2]  }
   0x8   :  { %v381_v17 = vshrl.u32 %v28_v16, 7  ;;  %v131_v20 = vand.u32 127, %v28_v16  ;;  %s210_s2 = sshll.u32 %s318_s0, 4  ;;  %s211_s2 = int_to_ptr.vmem [resolvable:$true] %s210_s2 }
   0x9   :  { %266 = vmatpush3.bf16.msra.mxu0 %v263_v5  ;;  %280 = vmatpush3.bf16.msra.mxu1 %v263_v5  ;;  %s294_s10 = scalar_lea.vmem %s211_s2, 512  ;;  %p299_p1 = scmp.lt.s32.totalorder %s211_s2, %s211_s2 }
   0xa   :  { %268 = vmatprep.subr.bf16.mxu0 %v267_v10  ;;  %277 = vmatprep.subr.bf16.mxu1 %v267_v10  ;;  %v30_v18 = vsub.s32 0, %v381_v17  ;;  %vm132_vm1 = vcmp.lt.s32.totalorder %v131_v20, 32  ;;  %v187_v1 = vsub.s32 1, %v381_v17  ;;  %v195_v3 = vsub.s32 2, %v381_v17  ;;  %p295_p0 = scmp.ne.s32.totalorder %s211_s2, %s294_s10  ;;  %p300_p2 = scmp.lt.s32.totalorder %s294_s10, %s294_s10 }
   0xc   :  { %v31_v21 = vrot.slane %v387_v19, %v30_v18  ;;  %v188_v4 = vrot.slane %v387_v19, %v187_v1  ;;  %v196_v6 = vrot.slane %v387_v19, %v195_v3  ;;  %p301_p3 = por %p300_p2, %p299_p1 }
   0xd   :  { %270 = vmatpush3.bf16.msra.mxu0 %v267_v10  ;;  %281 = vmatpush3.bf16.msra.mxu1 %v267_v10 }
   0xe   :  { %272 = vmatprep.subr.bf16.mxu0 %v271_v13  ;;  %278 = vmatprep.subr.bf16.mxu1 %v271_v13  ;;  %p302_p4 = pnand %p301_p3, %p295_p0 }
  0x11   :  { %274 = vmatpush3.bf16.msra.mxu0 %v271_v13  ;;  %282 = vmatpush3.bf16.msra.mxu1 %v271_v13 }
  0x14   :  { %254 = vmatmul.mubr.msk.f32.vlgmr.msra.gmra.mrb[0].mxu0 %vm32_vm0, %v16_v14  ;;  %257 = vmatmul.mubr.msk.f32.vlgmr.msra.gmra.mrb[0].mxu1 %vm32_vm0, %v18_v15 }
  0xe7   :  { %v255_v22 = vpop.f32.mrb[0].mxu0  ;;  %v258_v23 = vpop.f32.mrb[0].mxu1 }
  0xe8   :  { %v111_v24 = vpop.f32.mrb[1].mxu0  ;;  %v121_v25 = vpop.f32.mrb[1].mxu1  ;;  %v127_v26 = vadd.f32 %v258_v23, %v31_v21  ;;  %v117_v29 = vadd.f32 %v255_v22, %v31_v21 }
  0xe9   :  { %v112_v27 = vadd.f32 %v111_v24, %v31_v21  ;;  %v122_v28 = vadd.f32 %v121_v25, %v31_v21 }
  0xea   :  { %v136_v32 = vsel %vm132_vm1, %v127_v26, 0.0  ;;  %v134_v33 = vsel %vm132_vm1, %v117_v29, 0.0 }
  0xeb   :  { %v135_v30 = vsel %vm132_vm1, %v122_v28, 0.0  ;;  %v133_v31 = vsel %vm132_vm1, %v112_v27, 0.0 }
  0xec   :  { %141 = vadd.xlane.f32.xlu1 %v135_v30  ;;  %137 = vadd.xlane.f32.xlu0 %v133_v31 }
  0xf0   :  { %143 = vadd.xlane.f32.xlu1 %v136_v32  ;;  %139 = vadd.xlane.f32.xlu0 %v134_v33 }
 0x179   :  { %v142_v34 = vpop.xlane.xlu1 %141  ;;  %v138_v35 = vpop.xlane.xlu0 %137 }
 0x17a   :  { %v147_v36 = vmul.f32 0.03125, %v142_v34  ;;  %v145_v37 = vmul.f32 0.03125, %v138_v35 }
 0x17c   :  { %v151_v38 = vsub.f32 %v135_v30, %v147_v36  ;;  %v149_v39 = vsub.f32 %v133_v31, %v145_v37 }
 0x17d   :  { %v144_v40 = vpop.xlane.xlu1 %143  ;;  %v140_v41 = vpop.xlane.xlu0 %139 }
 0x17e   :  { %v148_v42 = vmul.f32 0.03125, %v144_v40  ;;  %v146_v43 = vmul.f32 0.03125, %v140_v41  ;;  %v153_v44 = vsel %vm132_vm1, %v149_v39, 0.0  ;;  %v155_v48 = vsel %vm132_vm1, %v151_v38, 0.0 }
 0x17f   :  { %v157_v45 = vmul.f32 %v153_v44, %v153_v44  ;;  %v159_v50 = vmul.f32 %v155_v48, %v155_v48 }
 0x180   :  { %v152_v46 = vsub.f32 %v136_v32, %v148_v42  ;;  %v150_v47 = vsub.f32 %v134_v33, %v146_v43 }
 0x181   :  { %161 = vadd.xlane.f32.xlu0 %v157_v45 }
 0x182   :  { %v154_v49 = vsel %vm132_vm1, %v150_v47, 0.0  ;;  %v156_v52 = vsel %vm132_vm1, %v152_v46, 0.0 }
 0x183   :  { %v158_v51 = vmul.f32 %v154_v49, %v154_v49  ;;  %v160_v53 = vmul.f32 %v156_v52, %v156_v52 }
 0x185   :  { %165 = vadd.xlane.f32.xlu0 %v159_v50  ;;  %163 = vadd.xlane.f32.xlu1 %v158_v51 }
 0x189   :  { %167 = vadd.xlane.f32.xlu1 %v160_v53 }
 0x20e   :  { %v162_v54 = vpop.xlane.xlu0 %161 }
 0x20f   :  { %v169_v55 = vmul.f32 0.03125, %v162_v54 }
 0x211   :  { %v173_v56 = vadd.f32 1e-05, %v169_v55 }
 0x212   :  { %v164_v57 = vpop.xlane.xlu1 %163  ;;  %v166_v58 = vpop.xlane.xlu0 %165 }
 0x213   :  { %286 = vrsqrt.f32 %v173_v56  ;;  %v170_v59 = vmul.f32 0.03125, %v164_v57  ;;  %v171_v60 = vmul.f32 0.03125, %v166_v58 }
 0x215   :  { %v174_v61 = vadd.f32 1e-05, %v170_v59  ;;  %v175_v62 = vadd.f32 1e-05, %v171_v60 }
 0x216   :  { %v168_v63 = vpop.xlane.xlu1 %167 }
 0x217   :  { %288 = vrsqrt.f32 %v174_v61  ;;  %v172_v0 = vmul.f32 0.03125, %v168_v63 }
 0x218   :  { %290 = vrsqrt.f32 %v175_v62 }
 0x219   :  { %v176_v2 = vadd.f32 1e-05, %v172_v0 }
 0x21b   :  { %292 = vrsqrt.f32 %v176_v2 }
 0x21d   :  { %v287_v5 = vpop.eup %286 }
 0x21e   :  { %v181_v7 = vmul.f32 %v287_v5, %v153_v44 }
 0x220   :  { %v189_v8 = vmul.f32 %v188_v4, %v181_v7 }
 0x221   :  { %v289_v9 = vpop.eup %288 }
 0x222   :  { %v291_v10 = vpop.eup %290  ;;  %v182_v11 = vmul.f32 %v289_v9, %v154_v49  ;;  %v197_v12 = vadd.f32 %v196_v6, %v189_v8 }
 0x223   :  { %v183_v13 = vmul.f32 %v291_v10, %v155_v48 }
 0x224   :  { %v190_v14 = vmul.f32 %v188_v4, %v182_v11  ;;  %201 = vst [vmem:[#allocation2] sm:$0xff] %v197_v12 }
 0x225   :  { %v293_v15 = vpop.eup %292  ;;  %v191_v16 = vmul.f32 %v188_v4, %v183_v13 }
 0x226   :  { %v184_v18 = vmul.f32 %v293_v15, %v156_v52  ;;  %v198_v20 = vadd.f32 %v196_v6, %v190_v14 }
 0x227   :  { %v199_v17 = vadd.f32 %v196_v6, %v191_v16 }
 0x228   :  { %v192_v21 = vmul.f32 %v188_v4, %v184_v18  ;;  %202 = vst [vmem:[#allocation2 + $0x8] sm:$0xff] %v198_v20 }
 0x229   :  { %203 = vst [vmem:[#allocation2 + $0x10] sm:$0xff] %v199_v17 }
 0x22a   :  { %v200_v19 = vadd.f32 %v196_v6, %v192_v21 }
 0x22c   :  { %204 = vst [vmem:[#allocation2 + $0x18] sm:$0xff] %v200_v19 }
 0x22d   :  { %305 = shalt.err (!%p302_p4)
}
 0x22e   :  { %s306_s13 = scalar_lea.hbm %s417_s3, 512 }
 0x22f   :  { %p307_p5 = scmp.ne.s32.totalorder %s417_s3, %s306_s13  ;;  %p310_p6 = scmp.lt.u32.totalorder %s306_s13, %s417_s3 }
 0x231   :  { %p312_p7 = pnand %p310_p6, %p307_p5 }
 0x233   :  { %315 = shalt.err (!%p312_p7)
}
 0x234   :  { %s319_s18 = smov 128   ;;  %s320_s19 = smov 8  }
 0x235   :  { %216 = dma.vmem_to_hbm [thread:$0]  %s211_s2, 512, %s417_s3, [#allocation3], %s319_s18, %s319_s18, %s320_s19  }
 0x236   :  { %316 = dma.done.wait [#allocation3], 512  }
 0x237   :  { %317 = vsyncadd [#allocation3], 4294966784 }
 0x238   :  { %220 = vsyncpa [#allocation3], 1 }

</bundles_post_ra>
